<compile_context>
chip_gen: v5e
topology: v5e:2x2
jax: 0.10.0
libtpu: 0.0.40
codegen_flags: <defaults>
</compile_context>

<pallas_src>
import functools
import math

import jax
import jax.numpy as jnp
from jax.experimental import pallas as pl
from jax.experimental.pallas import tpu as pltpu


def _lightconv_kernel(w_ref, x_ref, o_ref, *, padding):
    """One (block_rows, T) tile of rows per grid step.

    w_ref: (block_rows, K) f32 softmaxed weights; row r holds the weights of
           head (block_start + r) % H (block starts are head-aligned).
    x_ref: (block_rows, T) input rows, storage dtype.
    o_ref: (block_rows, T) output rows.
    """
    K = w_ref.shape[-1]
    T = x_ref.shape[-1]
    P = padding

    x = x_ref[...]                                    # storage dtype (no f32 blow-up)
    w = w_ref[...]                                    # f32, tiny
    t_idx = jax.lax.broadcasted_iota(jnp.int32, x.shape, 1)

    def shifted_term(k):
        # Want x[:, t + k - P], zero outside [0, T).
        if k == P:
            return x
        rolled = pltpu.roll(x, shift=(P - k) % T, axis=1)   # rolled[t] = x[(t + k - P) % T]
        valid = (t_idx >= (P - k)) & (t_idx < (T + P - k))  # unwrapped & in-bounds source
        return jnp.where(valid, rolled, jnp.zeros_like(rolled))

    # K is small (fairseq uses K <= 31): static unroll with immediate
    # accumulation keeps only x, acc and one term live. f32 accumulation via
    # the f32-weight multiply (per-term upcast).
    acc = w[:, 0:1] * shifted_term(0)
    for k in range(1, K):
        acc = acc + w[:, k:k + 1] * shifted_term(k)

    o_ref[...] = acc.astype(o_ref.dtype)


def _round_down(x, m):
    return (x // m) * m


def lightconv_forward(x, weight, *, num_heads, kernel_size, padding,
                      weight_softmax=True, block_rows=None,
                      vmem_limit_bytes=48 * 1024 * 1024):
    """LightConv forward. x: (B, T, C), weight: (H, 1, K) -> (B, T, C)."""
    B, T, C = x.shape
    H = num_heads
    K = kernel_size
    assert C % H == 0, "channels must be divisible by num_heads"
    # The conv output length must equal T for the final .view(B, T, C) to be
    # valid (the standard odd-K, padding=K//2 configuration).
    assert 2 * padding == K - 1, "padding must preserve T (odd K, padding=K//2)"

    R = B * C                          # rows of the depthwise view; row r uses head r % H
    x2d = jnp.reshape(x, (R, T))       # free row-major reshape (== torch .view(-1, H, T) flattened)

    w = jnp.reshape(weight, (H, K)).astype(jnp.float32)
    if weight_softmax:
        w = jax.nn.softmax(w, axis=-1)     # tiny, do it on the host side once
    # (weight dropout: identity at inference)

    # Row tile: a multiple of lcm(8, H) so every block starts on a head
    # boundary and satisfies the sublane rule; sized so the in/out blocks
    # (double buffered) plus f32 temporaries stay well inside the VMEM limit.
    base = 8 * H // math.gcd(8, H)
    if block_rows is None:
        lane_bytes = ((T + 127) // 128) * 128 * max(x.dtype.itemsize, 4)
        target = (vmem_limit_bytes // 3) // (4 * lane_bytes)
        cap = max(base, _round_down(1024, base))
        block_rows = max(base, min(_round_down(target, base), cap))
    tr = R if R <= block_rows else block_rows
    assert tr == R or (tr % 8 == 0 and tr % H == 0)

    # Per-row weight table for one block (block start rows are multiples of H).
    w_rows = jnp.tile(w, (tr // H, 1))          # (tr, K)

    kernel = functools.partial(_lightconv_kernel, padding=padding)

    out2d = pl.pallas_call(
        kernel,
        out_shape=jax.ShapeDtypeStruct((R, T), x.dtype),
        grid=(pl.cdiv(R, tr),),
        in_specs=[
            pl.BlockSpec((tr, K), lambda i: (0, 0)),   # tiny weight table, same block every step
            pl.BlockSpec((tr, T), lambda i: (i, 0)),   # input row tile, full T on lanes
        ],
        out_specs=pl.BlockSpec((tr, T), lambda i: (i, 0)),
        compiler_params=pltpu.CompilerParams(
            dimension_semantics=("parallel",),
            vmem_limit_bytes=vmem_limit_bytes),
    )(w_rows, x2d)

    return jnp.reshape(out2d, (B, T, C))       # free reshape, matches torch .view(B, T, C)


if __name__ == "__main__":
    # Small shapes consistent with the module: (B, T, C) input, H heads, kernel K.
    B, T, C = 2, 128, 16
    H, K = 4, 3
    padding = K // 2
    weight_softmax = True

    key = jax.random.PRNGKey(0)
    kx, kw = jax.random.split(key)
    x = jax.random.normal(kx, (B, T, C), dtype=jnp.float32)

    # Deterministic xavier_uniform_ init for weight (H, 1, K):
    # fan_in = 1*K, fan_out = H*K, bound = sqrt(6 / (fan_in + fan_out)).
    bound = (6.0 / (1 * K + H * K)) ** 0.5
    weight = jax.random.uniform(kw, (H, 1, K), minval=-bound, maxval=bound,
                                dtype=jnp.float32)

    out = lightconv_forward(x, weight, num_heads=H, kernel_size=K,
                            padding=padding, weight_softmax=weight_softmax)
    out = jax.block_until_ready(out)
    assert out.shape == (B, T, C), out.shape

    # Pure-JAX reference (same math, no Pallas) for a sanity check.
    w_sm = jax.nn.softmax(weight.reshape(H, K), axis=-1)
    xv = x.reshape(-1, H, T)
    xp = jnp.pad(xv, ((0, 0), (0, 0), (padding, padding)))
    ref = jnp.zeros_like(xv)
    for k in range(K):
        ref = ref + w_sm[None, :, k:k + 1] * xp[:, :, k:k + T]
    ref = ref.reshape(B, T, C)
    assert jnp.allclose(out, ref, atol=2e-5, rtol=1e-5)

    print("KERNEL_OK")
</pallas_src>

<mosaic_0001>
module attributes {stable_mosaic.version = 11 : i64} {
  func.func @_lightconv_kernel(%arg0: i32, %arg1: memref<32x3xf32, #tpu.memory_space<vmem>>, %arg2: memref<32x128xf32, #tpu.memory_space<vmem>>, %arg3: memref<32x128xf32, #tpu.memory_space<vmem>>) attributes {dimension_semantics = [#tpu.dimension_semantics<parallel>], iteration_bounds = array<i64: 1>, scalar_prefetch = 0 : i64, scratch_operands = 0 : i64, tpu.core_type = #tpu.core_type<tc>, window_params = [{pipeline_mode = #tpu.pipeline_mode<synchronous>, transform_indices = @transform_0, window_bounds = array<i64: 32, 3>}, {transform_indices = @transform_1, window_bounds = array<i64: 32, 128>}, {transform_indices = @transform_2, window_bounds = array<i64: 32, 128>}]} {
    %c0 = arith.constant 0 : index
    %c0_0 = arith.constant 0 : index
    %0 = vector.load %arg2[%c0, %c0_0] : memref<32x128xf32, #tpu.memory_space<vmem>>, vector<32x128xf32>
    %c0_1 = arith.constant 0 : index
    %c0_2 = arith.constant 0 : index
    %1 = vector.load %arg1[%c0_1, %c0_2] : memref<32x3xf32, #tpu.memory_space<vmem>>, vector<32x3xf32>
    %2 = tpu.iota {dimensions = array<i32: 1>} : vector<32x128xi32>
    %3 = vector.extract_strided_slice %1 {offsets = [0, 0], sizes = [32, 1], strides = [1, 1]} : vector<32x3xf32> to vector<32x1xf32>
    %c1_i32 = arith.constant 1 : i32
    %4 = tpu.dynamic_rotate %0 by %c1_i32 dim 1 : vector<32x128xf32>, i32 -> vector<32x128xf32>
    %c1_i32_3 = arith.constant 1 : i32
    %5 = vector.broadcast %c1_i32_3 : i32 to vector<32x128xi32>
    %6 = arith.cmpi sge, %2, %5 : vector<32x128xi32>
    %c129_i32 = arith.constant 129 : i32
    %7 = vector.broadcast %c129_i32 : i32 to vector<32x128xi32>
    %8 = arith.cmpi slt, %2, %7 : vector<32x128xi32>
    %9 = arith.andi %6, %8 : vector<32x128xi1>
    %cst = arith.constant 0.000000e+00 : f32
    %10 = vector.broadcast %cst : f32 to vector<32x128xf32>
    %11 = arith.select %9, %4, %10 : vector<32x128xi1>, vector<32x128xf32>
    %12 = vector.broadcast %3 : vector<32x1xf32> to vector<32x128xf32>
    %13 = arith.mulf %12, %11 : vector<32x128xf32>
    %14 = vector.extract_strided_slice %1 {offsets = [0, 1], sizes = [32, 1], strides = [1, 1]} : vector<32x3xf32> to vector<32x1xf32>
    %15 = vector.broadcast %14 : vector<32x1xf32> to vector<32x128xf32>
    %16 = arith.mulf %15, %0 : vector<32x128xf32>
    %17 = arith.addf %13, %16 : vector<32x128xf32>
    %18 = vector.extract_strided_slice %1 {offsets = [0, 2], sizes = [32, 1], strides = [1, 1]} : vector<32x3xf32> to vector<32x1xf32>
    %c127_i32 = arith.constant 127 : i32
    %19 = tpu.dynamic_rotate %0 by %c127_i32 dim 1 : vector<32x128xf32>, i32 -> vector<32x128xf32>
    %c-1_i32 = arith.constant -1 : i32
    %20 = vector.broadcast %c-1_i32 : i32 to vector<32x128xi32>
    %21 = arith.cmpi sge, %2, %20 : vector<32x128xi32>
    %c127_i32_4 = arith.constant 127 : i32
    %22 = vector.broadcast %c127_i32_4 : i32 to vector<32x128xi32>
    %23 = arith.cmpi slt, %2, %22 : vector<32x128xi32>
    %24 = arith.andi %21, %23 : vector<32x128xi1>
    %cst_5 = arith.constant 0.000000e+00 : f32
    %25 = vector.broadcast %cst_5 : f32 to vector<32x128xf32>
    %26 = arith.select %24, %19, %25 : vector<32x128xi1>, vector<32x128xf32>
    %27 = vector.broadcast %18 : vector<32x1xf32> to vector<32x128xf32>
    %28 = arith.mulf %27, %26 : vector<32x128xf32>
    %29 = arith.addf %17, %28 : vector<32x128xf32>
    %c0_6 = arith.constant 0 : index
    %c0_7 = arith.constant 0 : index
    %30 = vector.load %arg3[%c0_6, %c0_7] : memref<32x128xf32, #tpu.memory_space<vmem>>, vector<32x128xf32>
    tpu.vector_store %arg3[%c0_6, %c0_7], %29 {strides = array<i32>} : memref<32x128xf32, #tpu.memory_space<vmem>>, vector<32x128xf32>,
    return
  }
  func.func @transform_0(%arg0: i32) -> (i32, i32) {
    %c0_i32 = arith.constant 0 : i32
    %c0_i32_0 = arith.constant 0 : i32
    %c0_i32_1 = arith.constant 0 : i32
    return %c0_i32, %c0_i32_0 : i32, i32
  }
  func.func @transform_1(%arg0: i32) -> (i32, i32) {
    %c0_i32 = arith.constant 0 : i32
    %c0_i32_0 = arith.constant 0 : i32
    return %arg0, %c0_i32 : i32, i32
  }
  func.func @transform_2(%arg0: i32) -> (i32, i32) {
    %c0_i32 = arith.constant 0 : i32
    %c0_i32_0 = arith.constant 0 : i32
    return %arg0, %c0_i32 : i32, i32
  }
}

</mosaic_0001>

<bundles_post_ra>
// kernel: tpu_custom_call.1
= control target key start
LH: loop header
LB: loop body
LE: loop exit
PB: predicated region body
PF: predicated region fallthrough
CT: control target
= control target key end

     0   :  { %s189_s13 = smov 1   ;;  %v190_v3 = vmov 0   ;;  %s262_s0 = inlined_call_operand.vmem [shape: f32[32,3], index: 0, kind: input, shape index: {}]   ;;  %s263_s1 = inlined_call_operand.vmem [shape: f32[32,128], index: 1, kind: input, shape index: {}]   ;;  %s264_s2 = inlined_call_operand.hbm [shape: f32[32,128], index: 2, kind: output, shape index: {}]  }
   0x1   :  { %v215_v0 = vld [vmem:[%s263_s1 + $0x10] sm:$0xff]  ;;  %v12_v1 = vld [vmem:[%s263_s1] sm:$0xff]  ;;  %154 = vset.pattern.permute.xlu2 %v190_v3  ;;  %156 = vset.pattern.permute.xlu1 %v190_v3 }
   0x2   :  { %26 = vrot.lane.b32.xlu1 %v215_v0, %s189_s13  ;;  %22 = vrot.lane.b32.xlu0 %v12_v1, %s189_s13  ;;  %v16_v2 = vld [vmem:[%s262_s0] sm:$0xff] }
   0x3   :  { %155 = vset.pattern.permute.xlu0 %v190_v3  ;;  %39 = vperm.xlu2 %154, %v16_v2  }
   0x4   :  { %7 = vsyncpa [#allocation3], 0  ;;  %v227_v4 = vld [vmem:[%s263_s1 + $0x18] sm:$0xff]  ;;  %v232_v5 = vld [vmem:[%s263_s1 + $0x8] sm:$0xff]  ;;  %v191_v9 = vmov 1   ;;  %s192_s1 = smov 127   ;;  %v20_v21 = vlaneseq }
   0x5   :  { %v17_v6 = vld [vmem:[%s262_s0 + $0x8] sm:$0xff]  ;;  %v19_v7 = vld [vmem:[%s262_s0 + $0x18] sm:$0xff]  ;;  %v18_v8 = vld [vmem:[%s262_s0 + $0x10] sm:$0xff]  ;;  %v193_v10 = vmov 2   ;;  %s194_s0 = smov [#allocation2]   ;;  %s134_s29 = sshll.u32 %s264_s2, 4  ;;  %s135_s29 = int_to_ptr.hbm [resolvable:$true] %s134_s29 }
   0x6   :  { %v21_v23 = vand.u32 127, %v20_v21  ;;  %s132_s26 = sshll.u32 %s194_s0, 4  ;;  %s195_s30 = smov 128   ;;  %s133_s26 = int_to_ptr.vmem [resolvable:$true] %s132_s26 }
   0x7   :  { %s196_s3 = smov 8  }
   0x8   :  { %vm30_vm0 = vcmp.ge.s32.totalorder %v21_v23, 1  ;;  %vm94_vm1 = vcmp.lt.s32.totalorder %v21_v23, 127 }
   0xa   :  { %28 = vrot.lane.b32.xlu1 %v227_v4, %s189_s13  ;;  %24 = vrot.lane.b32.xlu0 %v232_v5, %s189_s13 }
   0xb   :  { %44 = vperm.xlu2 %154, %v17_v6  }
  0x12   :  { %54 = vperm.xlu1 %156, %v19_v7   ;;  %49 = vperm.xlu0 %155, %v18_v8  }
  0x13   :  { %157 = vset.pattern.permute.xlu2 %v191_v9 }
  0x14   :  { %62 = vperm.xlu2 %157, %v16_v2  }
  0x1a   :  { %158 = vset.pattern.permute.xlu1 %v191_v9  ;;  %159 = vset.pattern.permute.xlu0 %v191_v9 }
  0x1b   :  { %66 = vperm.xlu1 %158, %v17_v6   ;;  %74 = vperm.xlu0 %159, %v19_v7  }
  0x1c   :  { %70 = vperm.xlu2 %157, %v18_v8  }
  0x23   :  { %85 = vrot.lane.b32.xlu1 %v12_v1, %s192_s1  ;;  %160 = vset.pattern.permute.xlu0 %v193_v10 }
  0x24   :  { %101 = vperm.xlu0 %160, %v16_v2   ;;  %161 = vset.pattern.permute.xlu1 %v193_v10 }
  0x25   :  { %87 = vrot.lane.b32.xlu2 %v232_v5, %s192_s1 }
  0x26   :  { %162 = vset.pattern.permute.xlu2 %v193_v10 }
  0x2b   :  { %89 = vrot.lane.b32.xlu1 %v215_v0, %s192_s1 }
  0x2d   :  { %91 = vrot.lane.b32.xlu2 %v227_v4, %s192_s1 }
  0x33   :  { %105 = vperm.xlu1 %161, %v17_v6  }
  0x35   :  { %109 = vperm.xlu2 %162, %v18_v8  }
  0x3b   :  { %113 = vperm.xlu1 %161, %v19_v7  }
  0x5d   :  { %v40_v11 = vpop.permute.xlu2 %39 }
  0x65   :  { %v45_v12 = vpop.permute.xlu2 %44 }
  0x6e   :  { %v63_v15 = vpop.permute.xlu2 %62 }
  0x6f   :  { %v77_v29 = vmul.f32 %v63_v15, %v12_v1 }
  0x74   :  { %v27_v13 = vpop.permute.xlu1 %26  ;;  %v23_v14 = vpop.permute.xlu0 %22 }
  0x75   :  { %v33_v26 = vsel %vm30_vm0, %v23_v14, 0.0  ;;  %v35_v36 = vsel %vm30_vm0, %v27_v13, 0.0 }
  0x76   :  { %v71_v18 = vpop.permute.xlu2 %70  ;;  %v57_v28 = vmul.f32 %v40_v11, %v33_v26 }
  0x77   :  { %v79_v37 = vmul.f32 %v71_v18, %v215_v0 }
  0x78   :  { %v81_v33 = vadd.f32 %v77_v29, %v57_v28 }
  0x7c   :  { %v29_v16 = vpop.permute.xlu1 %28  ;;  %v25_v17 = vpop.permute.xlu0 %24 }
  0x7d   :  { %v34_v44 = vsel %vm30_vm0, %v25_v17, 0.0  ;;  %v36_v54 = vsel %vm30_vm0, %v29_v16, 0.0 }
  0x7e   :  { %v58_v47 = vmul.f32 %v45_v12, %v34_v44 }
  0x7f   :  { %v88_v22 = vpop.permute.xlu2 %87 }
  0x80   :  { %v97_v48 = vsel %vm94_vm1, %v88_v22, 0.0 }
  0x84   :  { %v55_v19 = vpop.permute.xlu1 %54  ;;  %v50_v20 = vpop.permute.xlu0 %49 }
  0x85   :  { %v59_v38 = vmul.f32 %v50_v20, %v35_v36  ;;  %v60_v55 = vmul.f32 %v55_v19, %v36_v54 }
  0x87   :  { %v92_v27 = vpop.permute.xlu2 %91  ;;  %v83_v42 = vadd.f32 %v79_v37, %v59_v38 }
  0x88   :  { %v99_v56 = vsel %vm94_vm1, %v92_v27, 0.0 }
  0x8d   :  { %v67_v24 = vpop.permute.xlu1 %66  ;;  %v75_v25 = vpop.permute.xlu0 %74 }
  0x8e   :  { %v78_v46 = vmul.f32 %v67_v24, %v232_v5  ;;  %v80_v53 = vmul.f32 %v75_v25, %v227_v4 }
  0x8f   :  { %v110_v39 = vpop.permute.xlu2 %109 }
  0x90   :  { %v82_v50 = vadd.f32 %v78_v46, %v58_v47  ;;  %v84_v58 = vadd.f32 %v80_v53, %v60_v55 }
  0x95   :  { %v86_v30 = vpop.permute.xlu1 %85 }
  0x96   :  { %v96_v31 = vsel %vm94_vm1, %v86_v30, 0.0  ;;  %v102_v32 = vpop.permute.xlu0 %101 }
  0x97   :  { %v116_v34 = vmul.f32 %v102_v32, %v96_v31 }
  0x99   :  { %v120_v35 = vadd.f32 %v116_v34, %v81_v33 }
  0x9b   :  { %124 = vst [vmem:[#allocation2] sm:$0xff] %v120_v35 }
  0x9d   :  { %v90_v40 = vpop.permute.xlu1 %89 }
  0x9e   :  { %v98_v41 = vsel %vm94_vm1, %v90_v40, 0.0 }
  0x9f   :  { %v118_v43 = vmul.f32 %v110_v39, %v98_v41 }
  0xa1   :  { %v122_v45 = vadd.f32 %v118_v43, %v83_v42 }
  0xa3   :  { %126 = vst [vmem:[#allocation2 + $0x10] sm:$0xff] %v122_v45 }
  0xa5   :  { %v106_v49 = vpop.permute.xlu1 %105 }
  0xa6   :  { %v117_v51 = vmul.f32 %v106_v49, %v97_v48 }
  0xa8   :  { %v121_v52 = vadd.f32 %v117_v51, %v82_v50 }
  0xaa   :  { %125 = vst [vmem:[#allocation2 + $0x8] sm:$0xff] %v121_v52 }
  0xad   :  { %v114_v57 = vpop.permute.xlu1 %113 }
  0xae   :  { %v119_v59 = vmul.f32 %v114_v57, %v99_v56 }
  0xb0   :  { %v123_v60 = vadd.f32 %v119_v59, %v84_v58 }
  0xb2   :  { %127 = vst [vmem:[#allocation2 + $0x18] sm:$0xff] %v123_v60 }
  0xb3   :  { %140 = dma.vmem_to_hbm [thread:$0]  %s133_s26, 512, %s135_s29, [#allocation3], %s195_s30, %s195_s30, %s196_s3  }
  0xb4   :  { %187 = dma.done.wait [#allocation3], 512  }
  0xb5   :  { %188 = vsyncadd [#allocation3], 4294966784 }
  0xb6   :  { %145 = vsyncpa [#allocation3], 1 }

</bundles_post_ra>
